<compile_context>
chip_gen: v7x
topology: tpu7x:2x2x1
jax: 0.10.0
libtpu: 0.0.40
codegen_flags: <defaults>
</compile_context>

<pallas_src>
import jax
import jax.numpy as jnp
from jax.experimental import pallas as pl
from jax.experimental.pallas import tpu as pltpu

EPS = 1e-5


def _bn_kernel(gamma_ref, beta_ref, x_ref, o_ref):
    """gamma_ref/beta_ref: (C,) f32 in SMEM. x_ref/o_ref: (N*C, H*W) in VMEM."""
    rows, hw = x_ref.shape            # rows = N*C
    c_dim = gamma_ref.shape[0]
    n = rows // c_dim
    inv_m = 1.0 / float(n * hw)

    # Single whole-tile load; everything below reuses these registers.
    # (astype is a trace-time no-op for the f32 path.)
    x = x_ref[...].astype(jnp.float32)                       # (rows, hw)

    # Static channel-combine matrix: comb[i, j] = 1 iff rows i, j share a
    # channel (row index = n*C + c).  Combining the N rows per channel is a
    # single tiny MXU matmul -- no scalar crossings, no sublane shuffles.
    ri = jax.lax.broadcasted_iota(jnp.int32, (rows, rows), 0)
    ci = jax.lax.broadcasted_iota(jnp.int32, (rows, rows), 1)
    comb = ((ri % c_dim) == (ci % c_dim)).astype(jnp.float32)  # (rows, rows)

    # Pass 1: per-row lane sums (XLU) -> per-channel mean, broadcast per row.
    s_row = jnp.sum(x, axis=-1, keepdims=True)                 # (rows, 1)
    mean_col = jnp.dot(comb, s_row,
                       preferred_element_type=jnp.float32) * inv_m

    # Pass 2 (same loaded data): centered sum of squares -> biased variance.
    xc = x - mean_col
    ss_row = jnp.sum(xc * xc, axis=-1, keepdims=True)          # (rows, 1)
    var_col = jnp.dot(comb, ss_row,
                      preferred_element_type=jnp.float32) * inv_m
    inv_std = jax.lax.rsqrt(var_col + EPS)                     # (rows, 1)

    # Fold SMEM gamma/beta scalars (read once) into (rows, 1) columns.
    row_ch = jax.lax.broadcasted_iota(jnp.int32, (rows, 1), 0) % c_dim
    gamma_col = jnp.zeros((rows, 1), jnp.float32)
    beta_col = jnp.zeros((rows, 1), jnp.float32)
    for c in range(c_dim):                                     # C is tiny/static
        sel = row_ch == c
        gamma_col = jnp.where(sel, gamma_ref[c], gamma_col)
        beta_col = jnp.where(sel, beta_ref[c], beta_col)

    scale = gamma_col * inv_std
    # One fused whole-tile normalize; single lane-dense, unmasked store.
    o_ref[...] = (xc * scale + beta_col).astype(o_ref.dtype)


def batchnorm2d_pallas(x_nchw, gamma, beta):
    """x_nchw: (N, C, H, W) float32. gamma/beta: (C,) float32."""
    n, c, h, w = x_nchw.shape
    hw = h * w
    rows = n * c

    # Free contiguous view of NCHW -- no HBM transpose / relayout.
    x2d = x_nchw.reshape(rows, hw)

    flops = 6 * rows * hw + 4 * rows * rows
    bytes_accessed = 2 * rows * hw * 4 + 2 * c * 4

    y2d = pl.pallas_call(
        _bn_kernel,
        out_shape=jax.ShapeDtypeStruct((rows, hw), x2d.dtype),
        in_specs=[
            pl.BlockSpec(memory_space=pltpu.MemorySpace.SMEM),   # gamma (C,)
            pl.BlockSpec(memory_space=pltpu.MemorySpace.SMEM),   # beta  (C,)
            pl.BlockSpec(memory_space=pltpu.MemorySpace.VMEM),   # x (rows, hw)
        ],
        out_specs=pl.BlockSpec(memory_space=pltpu.MemorySpace.VMEM),
        cost_estimate=pl.CostEstimate(
            flops=flops, transcendentals=rows, bytes_accessed=bytes_accessed),
    )(gamma.astype(jnp.float32), beta.astype(jnp.float32), x2d)

    return y2d.reshape(n, c, h, w)


def batchnorm2d_ref(x_nchw, gamma, beta):
    mean = jnp.mean(x_nchw, axis=(0, 2, 3), keepdims=True)
    var = jnp.mean((x_nchw - mean) ** 2, axis=(0, 2, 3), keepdims=True)
    g = gamma.reshape(1, -1, 1, 1)
    b = beta.reshape(1, -1, 1, 1)
    return (x_nchw - mean) * jax.lax.rsqrt(var + EPS) * g + b


if __name__ == "__main__":
    key = jax.random.PRNGKey(0)
    N, C, H, W = 2, 3, 16, 16
    # Shifted data also exercises the two-pass (cancellation-safe) variance.
    x = jax.random.normal(key, (N, C, H, W), dtype=jnp.float32) + 3.0

    # nn.BatchNorm2d(3) init: weight (gamma) = ones, bias (beta) = zeros.
    gamma = jnp.ones((C,), dtype=jnp.float32)
    beta = jnp.zeros((C,), dtype=jnp.float32)

    y = batchnorm2d_pallas(x, gamma, beta)
    jax.block_until_ready(y)

    y_ref = batchnorm2d_ref(x, gamma, beta)
    assert y.shape == (N, C, H, W)
    assert jnp.max(jnp.abs(y - y_ref)) < 1e-4, "mismatch vs reference"

    print("KERNEL_OK")
</pallas_src>

<mosaic_0001>
module attributes {stable_mosaic.version = 11 : i64} {
  func.func @_bn_kernel(%arg0: memref<3xf32, #tpu.memory_space<smem>>, %arg1: memref<3xf32, #tpu.memory_space<smem>>, %arg2: memref<6x256xf32, #tpu.memory_space<vmem>>, %arg3: memref<6x256xf32, #tpu.memory_space<vmem>>) attributes {dimension_semantics = [], scalar_prefetch = 0 : i64, scratch_operands = 0 : i64, tpu.core_type = #tpu.core_type<tc>} {
    %c0 = arith.constant 0 : index
    %c0_0 = arith.constant 0 : index
    %0 = vector.load %arg2[%c0, %c0_0] : memref<6x256xf32, #tpu.memory_space<vmem>>, vector<6x256xf32>
    %1 = tpu.iota {dimensions = array<i32: 0>} : vector<6x6xi32>
    %2 = tpu.iota {dimensions = array<i32: 1>} : vector<6x6xi32>
    %c3_i32 = arith.constant 3 : i32
    %c0_i32 = arith.constant 0 : i32
    %3 = arith.cmpi eq, %c3_i32, %c0_i32 : i32
    %c1_i32 = arith.constant 1 : i32
    %4 = arith.select %3, %c1_i32, %c3_i32 : i32
    %5 = vector.broadcast %4 : i32 to vector<6x6xi32>
    %6 = arith.remsi %1, %5 : vector<6x6xi32>
    %c0_i32_1 = arith.constant 0 : i32
    %7 = vector.broadcast %c0_i32_1 : i32 to vector<6x6xi32>
    %8 = arith.cmpi ne, %6, %7 : vector<6x6xi32>
    %c0_i32_2 = arith.constant 0 : i32
    %9 = vector.broadcast %c0_i32_2 : i32 to vector<6x6xi32>
    %10 = arith.cmpi slt, %6, %9 : vector<6x6xi32>
    %c0_i32_3 = arith.constant 0 : i32
    %11 = arith.cmpi slt, %4, %c0_i32_3 : i32
    %12 = vector.broadcast %11 : i1 to vector<6x6xi1>
    %13 = vector.broadcast %12 : vector<6x6xi1> to vector<6x6xi1>
    %14 = arith.xori %10, %13 : vector<6x6xi1>
    %15 = arith.andi %14, %8 : vector<6x6xi1>
    %16 = vector.broadcast %4 : i32 to vector<6x6xi32>
    %17 = arith.addi %6, %16 : vector<6x6xi32>
    %18 = arith.select %15, %17, %6 : vector<6x6xi1>, vector<6x6xi32>
    %c3_i32_4 = arith.constant 3 : i32
    %c0_i32_5 = arith.constant 0 : i32
    %19 = arith.cmpi eq, %c3_i32_4, %c0_i32_5 : i32
    %c1_i32_6 = arith.constant 1 : i32
    %20 = arith.select %19, %c1_i32_6, %c3_i32_4 : i32
    %21 = vector.broadcast %20 : i32 to vector<6x6xi32>
    %22 = arith.remsi %2, %21 : vector<6x6xi32>
    %c0_i32_7 = arith.constant 0 : i32
    %23 = vector.broadcast %c0_i32_7 : i32 to vector<6x6xi32>
    %24 = arith.cmpi ne, %22, %23 : vector<6x6xi32>
    %c0_i32_8 = arith.constant 0 : i32
    %25 = vector.broadcast %c0_i32_8 : i32 to vector<6x6xi32>
    %26 = arith.cmpi slt, %22, %25 : vector<6x6xi32>
    %c0_i32_9 = arith.constant 0 : i32
    %27 = arith.cmpi slt, %20, %c0_i32_9 : i32
    %28 = vector.broadcast %27 : i1 to vector<6x6xi1>
    %29 = vector.broadcast %28 : vector<6x6xi1> to vector<6x6xi1>
    %30 = arith.xori %26, %29 : vector<6x6xi1>
    %31 = arith.andi %30, %24 : vector<6x6xi1>
    %32 = vector.broadcast %20 : i32 to vector<6x6xi32>
    %33 = arith.addi %22, %32 : vector<6x6xi32>
    %34 = arith.select %31, %33, %22 : vector<6x6xi1>, vector<6x6xi32>
    %35 = arith.cmpi eq, %18, %34 : vector<6x6xi32>
    %36 = arith.extui %35 : vector<6x6xi1> to vector<6x6xi32>
    %37 = arith.sitofp %36 : vector<6x6xi32> to vector<6x6xf32>
    %cst = arith.constant dense<0.000000e+00> : vector<6xf32>
    %38 = vector.multi_reduction <add>, %0, %cst [1] : vector<6x256xf32> to vector<6xf32>
    %39 = vector.shape_cast %38 : vector<6xf32> to vector<6x1xf32>
    %cst_10 = arith.constant dense<0.000000e+00> : vector<6x1xf32>
    %40 = tpu.matmul %37, %39, %cst_10 {dimension_numbers = #tpu.dot_dimension_numbers<[1], [0], [0], [1], [0, 0, 1, 1], [], []>} : vector<6x6xf32>, vector<6x1xf32>, vector<6x1xf32> -> vector<6x1xf32>
    %cst_11 = arith.constant 0.001953125 : f32
    %41 = vector.broadcast %cst_11 : f32 to vector<6x1xf32>
    %42 = arith.mulf %40, %41 : vector<6x1xf32>
    %43 = vector.broadcast %42 : vector<6x1xf32> to vector<6x256xf32>
    %44 = arith.subf %0, %43 : vector<6x256xf32>
    %45 = arith.mulf %44, %44 : vector<6x256xf32>
    %cst_12 = arith.constant dense<0.000000e+00> : vector<6xf32>
    %46 = vector.multi_reduction <add>, %45, %cst_12 [1] : vector<6x256xf32> to vector<6xf32>
    %47 = vector.shape_cast %46 : vector<6xf32> to vector<6x1xf32>
    %cst_13 = arith.constant dense<0.000000e+00> : vector<6x1xf32>
    %48 = tpu.matmul %37, %47, %cst_13 {dimension_numbers = #tpu.dot_dimension_numbers<[1], [0], [0], [1], [0, 0, 1, 1], [], []>} : vector<6x6xf32>, vector<6x1xf32>, vector<6x1xf32> -> vector<6x1xf32>
    %cst_14 = arith.constant 0.001953125 : f32
    %49 = vector.broadcast %cst_14 : f32 to vector<6x1xf32>
    %50 = arith.mulf %48, %49 : vector<6x1xf32>
    %cst_15 = arith.constant 9.99999974E-6 : f32
    %51 = vector.broadcast %cst_15 : f32 to vector<6x1xf32>
    %52 = arith.addf %50, %51 : vector<6x1xf32>
    %53 = math.rsqrt %52 : vector<6x1xf32>
    %54 = tpu.iota {dimensions = array<i32: 0>} : vector<6x1xi32>
    %c3_i32_16 = arith.constant 3 : i32
    %c0_i32_17 = arith.constant 0 : i32
    %55 = arith.cmpi eq, %c3_i32_16, %c0_i32_17 : i32
    %c1_i32_18 = arith.constant 1 : i32
    %56 = arith.select %55, %c1_i32_18, %c3_i32_16 : i32
    %57 = vector.broadcast %56 : i32 to vector<6x1xi32>
    %58 = arith.remsi %54, %57 : vector<6x1xi32>
    %c0_i32_19 = arith.constant 0 : i32
    %59 = vector.broadcast %c0_i32_19 : i32 to vector<6x1xi32>
    %60 = arith.cmpi ne, %58, %59 : vector<6x1xi32>
    %c0_i32_20 = arith.constant 0 : i32
    %61 = vector.broadcast %c0_i32_20 : i32 to vector<6x1xi32>
    %62 = arith.cmpi slt, %58, %61 : vector<6x1xi32>
    %c0_i32_21 = arith.constant 0 : i32
    %63 = arith.cmpi slt, %56, %c0_i32_21 : i32
    %64 = vector.broadcast %63 : i1 to vector<6x1xi1>
    %65 = vector.broadcast %64 : vector<6x1xi1> to vector<6x1xi1>
    %66 = arith.xori %62, %65 : vector<6x1xi1>
    %67 = arith.andi %66, %60 : vector<6x1xi1>
    %68 = vector.broadcast %56 : i32 to vector<6x1xi32>
    %69 = arith.addi %58, %68 : vector<6x1xi32>
    %70 = arith.select %67, %69, %58 : vector<6x1xi1>, vector<6x1xi32>
    %cst_22 = arith.constant 0.000000e+00 : f32
    %71 = vector.broadcast %cst_22 : f32 to vector<6x1xf32>
    %cst_23 = arith.constant 0.000000e+00 : f32
    %72 = vector.broadcast %cst_23 : f32 to vector<6x1xf32>
    %c0_i32_24 = arith.constant 0 : i32
    %73 = vector.broadcast %c0_i32_24 : i32 to vector<6x1xi32>
    %74 = arith.cmpi eq, %70, %73 : vector<6x1xi32>
    %c0_25 = arith.constant 0 : index
    %75 = memref.load %arg0[%c0_25] : memref<3xf32, #tpu.memory_space<smem>>
    %76 = vector.broadcast %75 : f32 to vector<6x1xf32>
    %77 = arith.select %74, %76, %71 : vector<6x1xi1>, vector<6x1xf32>
    %c0_26 = arith.constant 0 : index
    %78 = memref.load %arg1[%c0_26] : memref<3xf32, #tpu.memory_space<smem>>
    %79 = vector.broadcast %78 : f32 to vector<6x1xf32>
    %80 = arith.select %74, %79, %72 : vector<6x1xi1>, vector<6x1xf32>
    %c1_i32_27 = arith.constant 1 : i32
    %81 = vector.broadcast %c1_i32_27 : i32 to vector<6x1xi32>
    %82 = arith.cmpi eq, %70, %81 : vector<6x1xi32>
    %c1 = arith.constant 1 : index
    %83 = memref.load %arg0[%c1] : memref<3xf32, #tpu.memory_space<smem>>
    %84 = vector.broadcast %83 : f32 to vector<6x1xf32>
    %85 = arith.select %82, %84, %77 : vector<6x1xi1>, vector<6x1xf32>
    %c1_28 = arith.constant 1 : index
    %86 = memref.load %arg1[%c1_28] : memref<3xf32, #tpu.memory_space<smem>>
    %87 = vector.broadcast %86 : f32 to vector<6x1xf32>
    %88 = arith.select %82, %87, %80 : vector<6x1xi1>, vector<6x1xf32>
    %c2_i32 = arith.constant 2 : i32
    %89 = vector.broadcast %c2_i32 : i32 to vector<6x1xi32>
    %90 = arith.cmpi eq, %70, %89 : vector<6x1xi32>
    %c2 = arith.constant 2 : index
    %91 = memref.load %arg0[%c2] : memref<3xf32, #tpu.memory_space<smem>>
    %92 = vector.broadcast %91 : f32 to vector<6x1xf32>
    %93 = arith.select %90, %92, %85 : vector<6x1xi1>, vector<6x1xf32>
    %c2_29 = arith.constant 2 : index
    %94 = memref.load %arg1[%c2_29] : memref<3xf32, #tpu.memory_space<smem>>
    %95 = vector.broadcast %94 : f32 to vector<6x1xf32>
    %96 = arith.select %90, %95, %88 : vector<6x1xi1>, vector<6x1xf32>
    %97 = arith.mulf %93, %53 : vector<6x1xf32>
    %98 = vector.broadcast %97 : vector<6x1xf32> to vector<6x256xf32>
    %99 = arith.mulf %44, %98 : vector<6x256xf32>
    %100 = vector.broadcast %96 : vector<6x1xf32> to vector<6x256xf32>
    %101 = arith.addf %99, %100 : vector<6x256xf32>
    %c0_30 = arith.constant 0 : index
    %c0_31 = arith.constant 0 : index
    %102 = vector.load %arg3[%c0_30, %c0_31] : memref<6x256xf32, #tpu.memory_space<vmem>>, vector<6x256xf32>
    tpu.vector_store %arg3[%c0_30, %c0_31], %101 {strides = array<i32>} : memref<6x256xf32, #tpu.memory_space<vmem>>, vector<6x256xf32>,
    return
  }
}

</mosaic_0001>

<bundles_post_ra>
// kernel: tpu_custom_call.1
= control target key start
LH: loop header
LB: loop body
LE: loop exit
PB: predicated region body
PF: predicated region fallthrough
CT: control target
= control target key end

     0   :  { %8 = vsyncpa [#allocation5], 0  ;;  %s511_s0 = inlined_call_operand.hbm [shape: f32[3], index: 0, kind: input, shape index: {}]   ;;  %s512_s1 = inlined_call_operand.vmem [shape: f32[3], index: 1, kind: input, shape index: {}]   ;;  %s513_s2 = inlined_call_operand.hbm [shape: f32[6,256], index: 2, kind: input, shape index: {}]   ;;  %s514_s3 = inlined_call_operand.hbm [shape: f32[6,256], index: 3, kind: output, shape index: {}]  }
   0x1   :  { %9 = vsyncpa [#allocation6], 0 }
   0x2   :  { %10 = vsyncpa [#allocation3], 0 }
   0x3   :  { %11 = vsyncpa [#allocation4], 0  ;;  %s26_s14 = sshll.u32 %s512_s1, 4  ;;  %s353_s17 = scalar_lea.hbm %s511_s0, 16  ;;  %s27_s14 = int_to_ptr.vmem [resolvable:$true] %s26_s14 }
   0x4   :  { %p354_p0 = scmp.ne.s32.totalorder %s511_s0, %s353_s17  ;;  %p357_p1 = scmp.lt.u32.totalorder %s353_s17, %s511_s0 }
   0x6   :  { %p359_p2 = pnand %p357_p1, %p354_p0 }
   0x8   :  { %362 = shalt.err (!%p359_p2)
}
   0x9   :  { %s427_s22 = smov [#allocation2]   ;;  %s363_s1 = scalar_lea.vmem %s27_s14, 16 }
   0xa   :  { %19 = dma.hbm_to_smem %s511_s0, 16, %s427_s22, [#allocation5]  }
   0xb   :  { %p364_p3 = scmp.ne.s32.totalorder %s27_s14, %s363_s1  ;;  %p368_p4 = scmp.lt.s32.totalorder %s27_s14, %s27_s14 }
   0xc   :  { %p369_p5 = scmp.lt.s32.totalorder %s363_s1, %s363_s1 }
   0xe   :  { %p370_p6 = por %p369_p5, %p368_p4 }
  0x10   :  { %p371_p7 = pnand %p370_p6, %p364_p3 }
  0x12   :  { %374 = shalt.err (!%p371_p7)
}
  0x13   :  { %s428_s25 = smov [#allocation7]   ;;  %s429_s26 = smov [#allocation8]  }
  0x14   :  { %29 = dma.vmem_to_smem %s27_s14, 16, %s428_s25, [#allocation6]  }
  0x15   :  { %s36_s27 = sshll.u32 %s429_s26, 4  ;;  %s375_s30 = scalar_lea.hbm %s513_s2, 256  ;;  %s37_s27 = int_to_ptr.vmem [resolvable:$true] %s36_s27 }
  0x16   :  { %p376_p8 = scmp.ne.s32.totalorder %s513_s2, %s375_s30  ;;  %p379_p9 = scmp.lt.u32.totalorder %s375_s30, %s513_s2 }
  0x18   :  { %p381_p10 = pnand %p379_p9, %p376_p8 }
  0x1a   :  { %384 = shalt.err (!%p381_p10)
}
  0x1b   :  { %s385_s7 = scalar_lea.vmem %s37_s27, 256  ;;  %p390_p12 = scmp.lt.s32.totalorder %s37_s27, %s37_s27 }
  0x1c   :  { %p386_p11 = scmp.ne.s32.totalorder %s37_s27, %s385_s7  ;;  %p391_p13 = scmp.lt.s32.totalorder %s385_s7, %s385_s7 }
  0x1e   :  { %p392_p0 = por %p391_p13, %p390_p12 }
  0x20   :  { %p393_p1 = pnand %p392_p0, %p386_p11 }
  0x22   :  { %396 = shalt.err (!%p393_p1)
}
  0x23   :  { %39 = dma.hbm_to_vmem [thread:$0]  %s513_s2, 256, %s37_s27, [#allocation3]  }
  0x24   :  { %419 = dma.done.wait [#allocation5], 16  }
  0x25   :  { %420 = vsyncadd [#allocation5], 4294967280 }
  0x26   :  { %421 = dma.done.wait [#allocation6], 16  }
  0x27   :  { %422 = vsyncadd [#allocation6], 4294967280 }
  0x28   :  { %423 = dma.done.wait [#allocation3], 256  }
  0x29   :  { %424 = vsyncadd [#allocation3], 4294967040 }
  0x2a   :  { %49 = sfence }
  0x2b   :  { %v50_v0 = vld [vmem:[#allocation8] sm:$0x3f]  ;;  %v51_v1 = vld [vmem:[#allocation8 + $0x8] sm:$0x3f]  ;;  %vm91_vm0 = vcmask 1045504   ;;  %v430_v4 = vmov 0.0   ;;  %v52_v6 = vlaneseq }
  0x2c   :  { %v92_v2 = vsel %vm91_vm0, %v50_v0, 0.0  ;;  %v93_v3 = vsel %vm91_vm0, %v51_v1, 0.0  ;;  %328 = vmatprep.subr.mxu0 %v430_v4  ;;  %333 = vmatprep.subr.mxu1 %v430_v4  ;;  %vm431_vm1 = vmmov 0   ;;  %vm97_vm9 = vcmask 48128   ;;  %s266_s2 = sld [smem:[#allocation2]]  ;;  %s320_s10 = sld [smem:[#allocation2 + $0x1]] }
  0x2d   :  { %v94_v5 = vadd.f32 %v93_v3, %v92_v2  ;;  %330 = vmatprep.mubr.msk.f32.mxu0 %vm431_vm1, %v430_v4  ;;  %335 = vmatprep.mubr.msk.f32.mxu1 %vm431_vm1, %v430_v4  ;;  %v53_v7 = vshrl.u32 %v52_v6, 7  ;;  %v55_v8 = vand.u32 127, %v52_v6  ;;  %v432_v25 = vmov 0   ;;  %s322_s11 = sld [smem:[#allocation2 + $0x2]]  ;;  %s269_s12 = sld [smem:[#allocation7]] }
  0x2e   :  { %349 = vset.pattern.permute.xlu0 %v432_v25  ;;  %350 = vset.pattern.permute.xlu1 %v432_v25  ;;  %s321_s13 = sld [smem:[#allocation7 + $0x1]]  ;;  %s323_s14 = sld [smem:[#allocation7 + $0x2]] }
  0x2f   :  { %95 = vadd.xlane.f32.xlu0 %v94_v5  ;;  %v483_v9 = vmul.u32.u64.low 2863311531, %v53_v7  ;;  %v484_v10 = vmul.u32.u64.high 2863311531, %v53_v7, %v483_v9  ;;  %v486_v11 = vmul.u32.u64.low 2863311531, %v55_v8  ;;  %v487_v12 = vmul.u32.u64.high 2863311531, %v55_v8, %v486_v11  ;;  %s433_s15 = smov [#allocation9]  }
  0x30   :  { %s304_s16 = sshll.u32 %s433_s15, 4  ;;  %s305_s16 = int_to_ptr.vmem [resolvable:$true] %s304_s16 }
  0x31   :  { %v62_v13 = vshrl.u32 %v484_v10, 1  ;;  %v78_v14 = vshrl.u32 %v487_v12, 1  ;;  %s397_s17 = scalar_lea.vmem %s305_s16, 256  ;;  %p402_p3 = scmp.lt.s32.totalorder %s305_s16, %s305_s16 }
  0x32   :  { %v267_v42 = vstv %s266_s2  ;;  %v274_v44 = vstv %s320_s10  ;;  %p398_p2 = scmp.ne.s32.totalorder %s305_s16, %s397_s17  ;;  %p403_p4 = scmp.lt.s32.totalorder %s397_s17, %s397_s17 }
  0x33   :  { %v63_v15 = vmul.u32 3, %v62_v13  ;;  %v79_v16 = vmul.u32 3, %v78_v14  ;;  %v281_v46 = vstv %s322_s11  ;;  %v270_v50 = vstv %s269_s12 }
  0x34   :  { %v277_v52 = vstv %s321_s13  ;;  %v284_v54 = vstv %s323_s14  ;;  %p404_p5 = por %p403_p4, %p402_p3 }
  0x35   :  { %v64_v17 = vsub.s32 %v53_v7, %v63_v15  ;;  %v80_v18 = vsub.s32 %v55_v8, %v79_v16 }
  0x36   :  { %p405_p6 = pnand %p404_p5, %p398_p2 }
  0x37   :  { %vm67_vm2 = vcmp.ne.s32.totalorder %v64_v17, 0  ;;  %vm68_vm3 = vcmp.lt.s32.totalorder %v64_v17, 0  ;;  %vm83_vm4 = vcmp.ne.s32.totalorder %v80_v18, 0  ;;  %vm84_vm5 = vcmp.lt.s32.totalorder %v80_v18, 0 }
  0x38   :  { %vm69_vm6 = vmand %vm68_vm3, %vm67_vm2  ;;  %v70_v19 = vadd.s32 3, %v64_v17  ;;  %v86_v20 = vadd.s32 3, %v80_v18 }
  0x39   :  { %vm85_vm7 = vmand %vm84_vm5, %vm83_vm4 }
  0x3a   :  { %v71_v21 = vsel %vm69_vm6, %v70_v19, %v64_v17  ;;  %v87_v22 = vsel %vm85_vm7, %v86_v20, %v80_v18 }
  0x3b   :  { %vm88_vm8 = vcmp.eq.s32.totalorder %v71_v21, %v87_v22  ;;  %vm265_vm10 = vcmp.eq.s32.totalorder %v71_v21, 0  ;;  %vm272_vm11 = vcmp.eq.s32.totalorder %v71_v21, 1  ;;  %vm279_vm12 = vcmp.eq.s32.totalorder %v71_v21, 2 }
  0x3c   :  { %v315_v23 = vsel %vm88_vm8, 1.0, %v430_v4  ;;  %v268_v43 = vsel %vm265_vm10, %v267_v42, 0.0  ;;  %v271_v51 = vsel %vm265_vm10, %v270_v50, 0.0 }
  0x3d   :  { %v275_v45 = vsel %vm272_vm11, %v274_v44, %v268_v43  ;;  %v278_v53 = vsel %vm272_vm11, %v277_v52, %v271_v51 }
  0x3e   :  { %v282_v47 = vsel %vm279_vm12, %v281_v46, %v275_v45  ;;  %v285_v56 = vsel %vm279_vm12, %v284_v54, %v278_v53 }
  0xbc   :  { %v96_v24 = vpop.xlane.xlu0 %95 }
  0xbd   :  { %329 = vmatpush3.msk.msra.mxu0 %vm91_vm0, %v96_v24 }
  0xbe   :  { %331 = vmatmul.mubr.msk.f32.vlgmr.msra.gmra.mrb[0].mxu0 %vm97_vm9, %v315_v23 }
 0x191   :  { %v170_v26 = vpop.f32.mrb[0].mxu0 }
 0x192   :  { %v174_v27 = vmul.f32 0.001953125, %v170_v26  ;;  %v332_v28 = vpop.f32.mrb[1].mxu0 }
 0x194   :  { %177 = vperm.xlu0 %349, %v174_v27  }
 0x213   :  { %v178_v29 = vpop.permute.xlu0 %177 }
 0x214   :  { %v180_v30 = vsub.f32 %v50_v0, %v178_v29  ;;  %v181_v31 = vsub.f32 %v51_v1, %v178_v29 }
 0x216   :  { %v182_v32 = vmul.f32 %v180_v30, %v180_v30  ;;  %v183_v33 = vmul.f32 %v181_v31, %v181_v31 }
 0x218   :  { %v184_v34 = vsel %vm91_vm0, %v182_v32, 0.0  ;;  %v185_v35 = vsel %vm91_vm0, %v183_v33, 0.0 }
 0x219   :  { %v186_v36 = vadd.f32 %v185_v35, %v184_v34 }
 0x21b   :  { %187 = vadd.xlane.f32.xlu1 %v186_v36 }
 0x2a8   :  { %v188_v37 = vpop.xlane.xlu1 %187 }
 0x2a9   :  { %334 = vmatpush3.msk.msra.mxu1 %vm91_vm0, %v188_v37 }
 0x2aa   :  { %336 = vmatmul.mubr.msk.f32.vlgmr.msra.gmra.mrb[0].mxu1 %vm97_vm9, %v315_v23 }
 0x37d   :  { %v258_v38 = vpop.f32.mrb[0].mxu1 }
 0x37e   :  { %v262_v39 = vmul.f32 0.001953125, %v258_v38  ;;  %v337_v40 = vpop.f32.mrb[1].mxu1 }
 0x380   :  { %v263_v41 = vadd.f32 1e-05, %v262_v39 }
 0x382   :  { %351 = vrsqrt.f32 %v263_v41 }
 0x38c   :  { %v352_v48 = vpop.eup %351 }
 0x38d   :  { %v286_v49 = vmul.f32 %v352_v48, %v282_v47 }
 0x38f   :  { %289 = vperm.xlu1 %350, %v286_v49  }
 0x40e   :  { %v290_v55 = vpop.permute.xlu1 %289 }
 0x40f   :  { %v292_v57 = vmul.f32 %v290_v55, %v180_v30  ;;  %v293_v58 = vmul.f32 %v290_v55, %v181_v31 }
 0x411   :  { %v294_v59 = vadd.f32 %v292_v57, %v285_v56  ;;  %v295_v60 = vadd.f32 %v293_v58, %v285_v56 }
 0x413   :  { %296 = vst [vmem:[#allocation9] sm:$0x3f] %v294_v59  ;;  %297 = vst [vmem:[#allocation9 + $0x8] sm:$0x3f] %v295_v60 }
 0x414   :  { %408 = shalt.err (!%p405_p6)
}
 0x415   :  { %s409_s20 = scalar_lea.hbm %s514_s3, 256 }
 0x416   :  { %p410_p7 = scmp.ne.s32.totalorder %s514_s3, %s409_s20  ;;  %p413_p8 = scmp.lt.u32.totalorder %s409_s20, %s514_s3 }
 0x418   :  { %p415_p9 = pnand %p413_p8, %p410_p7 }
 0x41a   :  { %418 = shalt.err (!%p415_p9)
}
 0x41b   :  { %307 = dma.vmem_to_hbm [thread:$0]  %s305_s16, 256, %s514_s3, [#allocation4]  }
 0x41c   :  { %425 = dma.done.wait [#allocation4], 256  }
 0x41d   :  { %426 = vsyncadd [#allocation4], 4294967040 }
 0x41e   :  { %311 = vsyncpa [#allocation3], 1 }
 0x41f   :  { %312 = vsyncpa [#allocation4], 1 }
 0x420   :  { %313 = vsyncpa [#allocation5], 1 }
 0x421   :  { %314 = vsyncpa [#allocation6], 1 }

</bundles_post_ra>
